<compile_context>
chip_gen: v7x
topology: tpu7x:2x2x1
jax: 0.10.0
libtpu: 0.0.40
codegen_flags: <defaults>
</compile_context>

<pallas_src>
import jax
import jax.numpy as jnp
from jax.experimental import pallas as pl
from jax.experimental.pallas import tpu as pltpu


# ---------------------------------------------------------------------------
# Kernel
# ---------------------------------------------------------------------------
def _conv1x1_kernel(x_ref, w_ref, b_ref, o_ref):
    # x_ref : (NB, C_in, TL)   activations tile (NCL layout)
    # w_ref : (C_out, C_in)    conv weight (kernel dim squeezed), resident
    # b_ref : (C_out, 1)       bias column, resident (broadcasts along lanes)
    # o_ref : (NB, C_out, TL)  output tile (lane-dense last dim)
    w = w_ref[...]
    b = b_ref[...]
    nb = x_ref.shape[0]
    # NB is small (<= 16) and static -> unrolled loop of tiny MXU matmuls.
    # Avoids any (o,b,l)->(b,o,l) relayout an einsum formulation would need.
    for i in range(nb):
        acc = jnp.dot(w, x_ref[i], preferred_element_type=jnp.float32)
        o_ref[i] = (acc + b).astype(o_ref.dtype)


# ---------------------------------------------------------------------------
# Tiling heuristics
# ---------------------------------------------------------------------------
_TARGET_STEP_BYTES = 3 * 1024 * 1024   # ~2-4 MiB of HBM traffic per grid step
_MAX_L_TILE = 65536                    # multiple of 128; ~3 MiB/step at C_in+C_out=12 f32
_MAX_BATCH_FOLD = 16                   # cap on batches folded per grid step


def _round_up(x, m):
    return ((x + m - 1) // m) * m


def _pick_tiles(n, c_in, c_out, length, itemsize):
    """Choose (batch_fold NB, L-tile TL)."""
    if length < 128:
        tl = length  # full-extent last dim is always a legal block shape
    else:
        # Lane-dense tile, capped by the per-step traffic budget; ragged tail is masked.
        tl = min(_MAX_L_TILE, _round_up(length, 128))
        # Keep >= 2 L-tiles for megacore balance when the batch axis can't supply it.
        if n < 2 and length > 256:
            tl = min(tl, _round_up(pl.cdiv(length, 2), 128))

    step_bytes_per_batch = (c_in + c_out) * tl * itemsize
    nb = max(1, _TARGET_STEP_BYTES // max(1, step_bytes_per_batch))
    nb = int(min(nb, n, _MAX_BATCH_FOLD))
    return nb, tl


# ---------------------------------------------------------------------------
# Wrapper
# ---------------------------------------------------------------------------
def conv1d_1x1(x_ncl, weight_oc1, bias_o, *, force_pallas=False):
    """1x1 Conv1d forward (matches torch.nn.Conv1d(kernel_size=1) semantics).

    x_ncl:      (N, C_in, L)      float32
    weight_oc1: (C_out, C_in, 1)  float32  (PyTorch Conv1d weight layout)
    bias_o:     (C_out,)          float32
    returns:    (N, C_out, L)     float32
    """
    n, c_in, length = x_ncl.shape
    c_out = weight_oc1.shape[0]

    # Tiny, cheap parameter reshapes only (no activation transposes).
    w = weight_oc1[:, :, 0]            # (C_out, C_in)
    b_col = bias_o.reshape(c_out, 1)   # (C_out, 1) column -> broadcasts along L

    # Tiny problems: pallas_call launch + pipeline setup dominates -> plain XLA.
    if not force_pallas and n * max(c_in, c_out) * length < (1 << 16):
        return jnp.einsum("oc,ncl->nol", w, x_ncl) + bias_o[None, :, None]

    itemsize = jnp.dtype(x_ncl.dtype).itemsize
    nb, tl = _pick_tiles(n, c_in, c_out, length, itemsize)
    grid = (pl.cdiv(n, nb), pl.cdiv(length, tl))

    grid_spec = pl.GridSpec(
        grid=grid,
        in_specs=[
            pl.BlockSpec((nb, c_in, tl), lambda bi, li: (bi, 0, li)),
            pl.BlockSpec((c_out, c_in), lambda bi, li: (0, 0)),   # resident weight
            pl.BlockSpec((c_out, 1), lambda bi, li: (0, 0)),      # resident bias
        ],
        out_specs=pl.BlockSpec((nb, c_out, tl), lambda bi, li: (bi, 0, li)),
    )

    return pl.pallas_call(
        _conv1x1_kernel,
        out_shape=jax.ShapeDtypeStruct((n, c_out, length), x_ncl.dtype),
        grid_spec=grid_spec,
        compiler_params=pltpu.CompilerParams(
            # Both grid axes are independent tiles -> megacore-shardable (v7x).
            dimension_semantics=("parallel", "parallel"),
            # Headroom for the enlarged tiles on v5e's 16 MiB default scoped limit.
            vmem_limit_bytes=32 * 1024 * 1024,
        ),
    )(x_ncl, w, b_col)


# ---------------------------------------------------------------------------
# Demo / self-test
# ---------------------------------------------------------------------------
def _reference(x, weight, bias):
    return jnp.einsum("ncl,oc->nol", x, weight[:, :, 0]) + bias[None, :, None]


if __name__ == "__main__":
    # Module config: in_features=4, out_features=8, kernel_size=1, bias=True
    C_IN, C_OUT = 4, 8

    key = jax.random.PRNGKey(0)
    k_x, k_w, k_b = jax.random.split(key, 3)

    # Deterministic init mirroring init_weights(init_type='normal'):
    #   weight ~ Normal(0, 0.02), PyTorch Conv1d weight shape (C_out, C_in, 1)
    weight = 0.02 * jax.random.normal(k_w, (C_OUT, C_IN, 1), dtype=jnp.float32)
    #   bias keeps PyTorch's default Conv1d init: U(-1/sqrt(fan_in), 1/sqrt(fan_in))
    bound = 1.0 / jnp.sqrt(jnp.float32(C_IN * 1))
    bias = jax.random.uniform(k_b, (C_OUT,), dtype=jnp.float32,
                              minval=-bound, maxval=bound)

    # Test shapes exercise: the tiny primary demo, a 128-aligned L, a ragged L
    # (masked last tile), and a batch-folded case (NB=16 with a masked batch tail).
    test_shapes = [
        (2, 16),    # primary demo shape
        (3, 512),   # lane-aligned L
        (5, 300),   # L % 128 != 0 -> masked ragged tile
        (40, 16),   # small L, many batches -> batch folding + masked batch tail
    ]

    ok = True
    y_demo = None
    for (N, L) in test_shapes:
        x = jax.random.normal(jax.random.fold_in(k_x, N * 100003 + L),
                              (N, C_IN, L), dtype=jnp.float32)
        y = conv1d_1x1(x, weight, bias, force_pallas=True)
        y = jax.block_until_ready(y)
        y_ref = _reference(x, weight, bias)
        ok = ok and (y.shape == (N, C_OUT, L))
        ok = ok and bool(jnp.allclose(y, y_ref, atol=1e-5, rtol=1e-5))
        if (N, L) == (2, 16):
            y_demo = y

    assert y_demo is not None and y_demo.shape == (2, C_OUT, 16)
    assert ok

    print("KERNEL_OK")
</pallas_src>

<mosaic_0001>
module attributes {stable_mosaic.version = 11 : i64} {
  func.func @_conv1x1_kernel(%arg0: i32, %arg1: i32, %arg2: memref<2x4x16xf32, #tpu.memory_space<vmem>>, %arg3: memref<8x4xf32, #tpu.memory_space<vmem>>, %arg4: memref<8x1xf32, #tpu.memory_space<vmem>>, %arg5: memref<2x8x16xf32, #tpu.memory_space<vmem>>) attributes {dimension_semantics = [#tpu.dimension_semantics<parallel>, #tpu.dimension_semantics<parallel>], iteration_bounds = array<i64: 1, 1>, scalar_prefetch = 0 : i64, scratch_operands = 0 : i64, tpu.core_type = #tpu.core_type<tc>, window_params = [{transform_indices = @transform_0, window_bounds = array<i64: 2, 4, 16>}, {pipeline_mode = #tpu.pipeline_mode<synchronous>, transform_indices = @transform_1, window_bounds = array<i64: 8, 4>}, {pipeline_mode = #tpu.pipeline_mode<synchronous>, transform_indices = @transform_2, window_bounds = array<i64: 8, 1>}, {transform_indices = @transform_3, window_bounds = array<i64: 2, 8, 16>}]} {
    %c0 = arith.constant 0 : index
    %c0_0 = arith.constant 0 : index
    %0 = vector.load %arg3[%c0, %c0_0] : memref<8x4xf32, #tpu.memory_space<vmem>>, vector<8x4xf32>
    %c0_1 = arith.constant 0 : index
    %c0_2 = arith.constant 0 : index
    %1 = vector.load %arg4[%c0_1, %c0_2] : memref<8x1xf32, #tpu.memory_space<vmem>>, vector<8x1xf32>
    %c0_3 = arith.constant 0 : index
    %c0_4 = arith.constant 0 : index
    %c0_5 = arith.constant 0 : index
    %2 = vector.load %arg2[%c0_3, %c0_4, %c0_5] : memref<2x4x16xf32, #tpu.memory_space<vmem>>, vector<1x4x16xf32>
    %3 = vector.shape_cast %2 : vector<1x4x16xf32> to vector<4x16xf32>
    %cst = arith.constant dense<0.000000e+00> : vector<8x16xf32>
    %4 = tpu.matmul %0, %3, %cst {dimension_numbers = #tpu.dot_dimension_numbers<[1], [0], [0], [1], [0, 0, 1, 1], [], []>} : vector<8x4xf32>, vector<4x16xf32>, vector<8x16xf32> -> vector<8x16xf32>
    %5 = vector.broadcast %1 : vector<8x1xf32> to vector<8x16xf32>
    %6 = arith.addf %4, %5 : vector<8x16xf32>
    %c0_6 = arith.constant 0 : index
    %c0_7 = arith.constant 0 : index
    %c0_8 = arith.constant 0 : index
    %7 = vector.load %arg5[%c0_6, %c0_7, %c0_8] : memref<2x8x16xf32, #tpu.memory_space<vmem>>, vector<1x8x16xf32>
    %8 = vector.shape_cast %7 : vector<1x8x16xf32> to vector<8x16xf32>
    %9 = vector.shape_cast %6 : vector<8x16xf32> to vector<1x8x16xf32>
    tpu.vector_store %arg5[%c0_6, %c0_7, %c0_8], %9 {strides = array<i32>} : memref<2x8x16xf32, #tpu.memory_space<vmem>>, vector<1x8x16xf32>,
    %c1 = arith.constant 1 : index
    %c0_9 = arith.constant 0 : index
    %c0_10 = arith.constant 0 : index
    %10 = vector.load %arg2[%c1, %c0_9, %c0_10] : memref<2x4x16xf32, #tpu.memory_space<vmem>>, vector<1x4x16xf32>
    %11 = vector.shape_cast %10 : vector<1x4x16xf32> to vector<4x16xf32>
    %cst_11 = arith.constant dense<0.000000e+00> : vector<8x16xf32>
    %12 = tpu.matmul %0, %11, %cst_11 {dimension_numbers = #tpu.dot_dimension_numbers<[1], [0], [0], [1], [0, 0, 1, 1], [], []>} : vector<8x4xf32>, vector<4x16xf32>, vector<8x16xf32> -> vector<8x16xf32>
    %13 = vector.broadcast %1 : vector<8x1xf32> to vector<8x16xf32>
    %14 = arith.addf %12, %13 : vector<8x16xf32>
    %c1_12 = arith.constant 1 : index
    %c0_13 = arith.constant 0 : index
    %c0_14 = arith.constant 0 : index
    %15 = vector.load %arg5[%c1_12, %c0_13, %c0_14] : memref<2x8x16xf32, #tpu.memory_space<vmem>>, vector<1x8x16xf32>
    %16 = vector.shape_cast %15 : vector<1x8x16xf32> to vector<8x16xf32>
    %17 = vector.shape_cast %14 : vector<8x16xf32> to vector<1x8x16xf32>
    tpu.vector_store %arg5[%c1_12, %c0_13, %c0_14], %17 {strides = array<i32>} : memref<2x8x16xf32, #tpu.memory_space<vmem>>, vector<1x8x16xf32>,
    return
  }
  func.func @transform_0(%arg0: i32, %arg1: i32) -> (i32, i32, i32) {
    %c0_i32 = arith.constant 0 : i32
    %c0_i32_0 = arith.constant 0 : i32
    return %arg0, %c0_i32, %arg1 : i32, i32, i32
  }
  func.func @transform_1(%arg0: i32, %arg1: i32) -> (i32, i32) {
    %c0_i32 = arith.constant 0 : i32
    %c0_i32_0 = arith.constant 0 : i32
    %c0_i32_1 = arith.constant 0 : i32
    return %c0_i32, %c0_i32_0 : i32, i32
  }
  func.func @transform_2(%arg0: i32, %arg1: i32) -> (i32, i32) {
    %c0_i32 = arith.constant 0 : i32
    %c0_i32_0 = arith.constant 0 : i32
    %c0_i32_1 = arith.constant 0 : i32
    return %c0_i32, %c0_i32_0 : i32, i32
  }
  func.func @transform_3(%arg0: i32, %arg1: i32) -> (i32, i32, i32) {
    %c0_i32 = arith.constant 0 : i32
    %c0_i32_0 = arith.constant 0 : i32
    return %arg0, %c0_i32, %arg1 : i32, i32, i32
  }
}

</mosaic_0001>

<bundles_post_ra>
// kernel: tpu_custom_call.1
= control target key start
LH: loop header
LB: loop body
LE: loop exit
PB: predicated region body
PF: predicated region fallthrough
CT: control target
= control target key end

     0   :  { %vm27_vm0 = vcmask 1043456   ;;  %v246_v1 = vmov 0.0   ;;  %vm23_vm1 = vcmask 31744   ;;  %vm247_vm2 = vmmov 0   ;;  %s296_s0 = inlined_call_operand.vmem [shape: f32[2,4,16], index: 0, kind: input, shape index: {}]   ;;  %s297_s1 = inlined_call_operand.vmem [shape: f32[8,4], index: 1, kind: input, shape index: {}]   ;;  %s298_s2 = inlined_call_operand.vmem [shape: f32[8,1], index: 2, kind: input, shape index: {}]   ;;  %s299_s3 = inlined_call_operand.hbm [shape: f32[2,8,16], index: 3, kind: output, shape index: {}]  }
   0x1   :  { %v17_v0 = vld [vmem:[%s296_s0] sm:$0xf]  ;;  %205 = vmatprep.subr.mxu0 %v246_v1  ;;  %210 = vmatprep.subr.mxu1 %v246_v1  ;;  %v198_v2 = vld [vmem:[%s296_s0 + $0x4] sm:$0xf] }
   0x2   :  { %v15_v3 = vld [vmem:[%s297_s1] sm:$0xff]  ;;  %206 = vmatpush3.msk.msra.mxu0 %vm27_vm0, %v17_v0  ;;  %207 = vmatprep.mubr.msk.f32.mxu0 %vm247_vm2, %v246_v1 }
   0x3   :  { %8 = vsyncpa [#allocation3], 0  ;;  %211 = vmatpush3.msk.msra.mxu1 %vm27_vm0, %v198_v2  ;;  %212 = vmatprep.mubr.msk.f32.mxu1 %vm247_vm2, %v246_v1  ;;  %v16_v4 = vld [vmem:[%s298_s2] sm:$0xff]  ;;  %v248_v5 = vmov 0   ;;  %s249_s0 = smov [#allocation2]   ;;  %vm101_vm3 = vcmask 130048  }
   0x4   :  { %208 = vmatmul.mubr.msk.f32.vlgmr.msra.gmra.mrb[0].mxu0 %vm23_vm1, %v15_v3  ;;  %213 = vmatmul.mubr.msk.f32.vlgmr.msra.gmra.mrb[0].mxu1 %vm23_vm1, %v15_v3  ;;  %s185_s20 = sshll.u32 %s249_s0, 4  ;;  %s186_s20 = int_to_ptr.vmem [resolvable:$true] %s185_s20 }
   0x5   :  { %221 = vset.pattern.permute.xlu0 %v248_v5  ;;  %s222_s1 = scalar_lea.vmem %s186_s20, 256  ;;  %p227_p1 = scmp.lt.s32.totalorder %s186_s20, %s186_s20 }
   0x6   :  { %20 = vperm.xlu0 %221, %v16_v4   ;;  %p223_p0 = scmp.ne.s32.totalorder %s186_s20, %s222_s1  ;;  %p228_p2 = scmp.lt.s32.totalorder %s222_s1, %s222_s1 }
   0x8   :  { %p229_p3 = por %p228_p2, %p227_p1 }
   0xa   :  { %p230_p4 = pnand %p229_p3, %p223_p0 }
  0x85   :  { %v21_v6 = vpop.permute.xlu0 %20 }
  0xd7   :  { %v97_v7 = vpop.f32.mrb[0].mxu0  ;;  %v174_v8 = vpop.f32.mrb[0].mxu1 }
  0xd8   :  { %v98_v9 = vadd.f32 %v97_v7, %v21_v6  ;;  %v175_v10 = vadd.f32 %v174_v8, %v21_v6  ;;  %v209_v11 = vpop.f32.mrb[1].mxu0  ;;  %v214_v12 = vpop.f32.mrb[1].mxu1 }
  0xda   :  { %102 = vst.msk [vmem:[#allocation2] sm:$0xff] %vm101_vm3, %v98_v9  ;;  %179 = vst.msk [vmem:[#allocation2 + $0x8] sm:$0xff] %vm101_vm3, %v175_v10 }
  0xdb   :  { %233 = shalt.err (!%p230_p4)
}
  0xdc   :  { %s234_s22 = scalar_lea.hbm %s299_s3, 256 }
  0xdd   :  { %p235_p5 = scmp.ne.s32.totalorder %s299_s3, %s234_s22  ;;  %p238_p6 = scmp.lt.u32.totalorder %s234_s22, %s299_s3 }
  0xdf   :  { %p240_p7 = pnand %p238_p6, %p235_p5 }
  0xe1   :  { %243 = shalt.err (!%p240_p7)
}
  0xe2   :  { %s250_s27 = smov 128   ;;  %s251_s28 = smov 8  }
  0xe3   :  { %191 = dma.vmem_to_hbm [thread:$0]  %s186_s20, 256, %s299_s3, [#allocation3], %s250_s27, %s250_s27, %s251_s28  }
  0xe4   :  { %244 = dma.done.wait [#allocation3], 256  }
  0xe5   :  { %245 = vsyncadd [#allocation3], 4294967040 }
  0xe6   :  { %195 = vsyncpa [#allocation3], 1 }

</bundles_post_ra>
